<compile_context>
chip_gen: v5e
topology: v5e:2x2
jax: 0.10.0
libtpu: 0.0.40
codegen_flags: <defaults>
</compile_context>

<pallas_src>
import numpy as np
import jax
import jax.numpy as jnp
from jax.experimental import pallas as pl
from jax.experimental.pallas import tpu as pltpu


def state_decoder_kernel(x_ref, w1_ref, b1_ref, w2_ref, b2_ref, o_ref):
    # fc1 -> relu  (MXU matmul, f32 accumulate, VPU max)
    h = jnp.dot(x_ref[...], w1_ref[...],
                preferred_element_type=jnp.float32) + b1_ref[...]
    h = jnp.maximum(h, 0.0)
    # fc2
    o_ref[...] = (jnp.dot(h, w2_ref[...], preferred_element_type=jnp.float32)
                  + b2_ref[...]).astype(o_ref.dtype)


def state_decoder_forward(x, w1, b1, w2, b2, *, block_b=512):
    """StateDecoder forward: relu(x @ w1.T + b1) @ w2.T + b2.

    Params are in PyTorch nn.Linear layout: w1 (16, D), b1 (16,),
    w2 (2, 16), b2 (2,).  x is (B, D).
    """
    B, D = x.shape
    H = w1.shape[0]
    O = w2.shape[0]

    # (in, out) layout so the kernel does y = x @ W + b (== x @ W.T + b in torch).
    w1t = jnp.asarray(w1).T.astype(jnp.float32)      # (D, H)
    w2t = jnp.asarray(w2).T.astype(jnp.float32)      # (H, O)
    b1r = jnp.asarray(b1).reshape(1, H).astype(jnp.float32)
    b2r = jnp.asarray(b2).reshape(1, O).astype(jnp.float32)

    # Pad batch to a sublane multiple, pick the largest tile <= block_b.
    Bp = pl.cdiv(B, 8) * 8
    tb = min(Bp, block_b)
    Bp = pl.cdiv(Bp, tb) * tb
    if Bp != B:
        x = jnp.pad(x, ((0, Bp - B), (0, 0)))

    out = pl.pallas_call(
        state_decoder_kernel,
        out_shape=jax.ShapeDtypeStruct((Bp, O), jnp.float32),
        grid_spec=pltpu.PrefetchScalarGridSpec(
            num_scalar_prefetch=0,
            grid=(Bp // tb,),
            in_specs=[
                pl.BlockSpec((tb, D), lambda i: (i, 0)),   # batch tile of x
                pl.BlockSpec((D, H), lambda i: (0, 0)),    # fc1 weight (resident)
                pl.BlockSpec((1, H), lambda i: (0, 0)),    # fc1 bias
                pl.BlockSpec((H, O), lambda i: (0, 0)),    # fc2 weight
                pl.BlockSpec((1, O), lambda i: (0, 0)),    # fc2 bias
            ],
            out_specs=pl.BlockSpec((tb, O), lambda i: (i, 0)),
        ),
        compiler_params=pltpu.CompilerParams(
            dimension_semantics=("parallel",)),
    )(x.astype(jnp.float32), w1t, b1r, w2t, b2r)
    return out[:B]


def reference_forward(x, w1, b1, w2, b2):
    """Numpy mirror of the PyTorch StateDecoder.forward."""
    x = np.asarray(x, np.float32)
    w1 = np.asarray(w1, np.float32); b1 = np.asarray(b1, np.float32)
    w2 = np.asarray(w2, np.float32); b2 = np.asarray(b2, np.float32)
    h = np.maximum(x @ w1.T + b1, 0.0)
    return h @ w2.T + b2


if __name__ == "__main__":
    D = 32      # discrete_states
    B = 8       # batch of (soft) state distributions

    key = jax.random.PRNGKey(0)
    k = jax.random.split(key, 5)

    # PyTorch nn.Linear-style params (weight: (out, in), bias: (out,)).
    bound1 = 1.0 / np.sqrt(D)
    bound2 = 1.0 / np.sqrt(16)
    w1 = jax.random.uniform(k[0], (16, D), jnp.float32, -bound1, bound1)
    b1 = jax.random.uniform(k[1], (16,), jnp.float32, -bound1, bound1)
    w2 = jax.random.uniform(k[2], (2, 16), jnp.float32, -bound2, bound2)
    b2 = jax.random.uniform(k[3], (2,), jnp.float32, -bound2, bound2)

    # Inputs: soft distributions over the discrete states (as in the rollout).
    logits = jax.random.normal(k[4], (B, D), jnp.float32)
    x = jax.nn.softmax(logits, axis=-1)

    out = state_decoder_forward(x, w1, b1, w2, b2)
    out = jax.block_until_ready(out)

    ref = reference_forward(x, w1, b1, w2, b2)
    assert out.shape == (B, 2)
    assert np.allclose(np.asarray(out), ref, atol=1e-5, rtol=1e-5)
    print("KERNEL_OK")
</pallas_src>

<mosaic_0001>
module attributes {stable_mosaic.version = 11 : i64} {
  func.func @state_decoder_kernel(%arg0: i32, %arg1: memref<8x32xf32, #tpu.memory_space<vmem>>, %arg2: memref<32x16xf32, #tpu.memory_space<vmem>>, %arg3: memref<1x16xf32, #tpu.memory_space<vmem>>, %arg4: memref<16x2xf32, #tpu.memory_space<vmem>>, %arg5: memref<1x2xf32, #tpu.memory_space<vmem>>, %arg6: memref<8x2xf32, #tpu.memory_space<vmem>>) attributes {dimension_semantics = [#tpu.dimension_semantics<parallel>], iteration_bounds = array<i64: 1>, scalar_prefetch = 0 : i64, scratch_operands = 0 : i64, tpu.core_type = #tpu.core_type<tc>, window_params = [{transform_indices = @transform_0, window_bounds = array<i64: 8, 32>}, {pipeline_mode = #tpu.pipeline_mode<synchronous>, transform_indices = @transform_1, window_bounds = array<i64: 32, 16>}, {pipeline_mode = #tpu.pipeline_mode<synchronous>, transform_indices = @transform_2, window_bounds = array<i64: 1, 16>}, {pipeline_mode = #tpu.pipeline_mode<synchronous>, transform_indices = @transform_3, window_bounds = array<i64: 16, 2>}, {pipeline_mode = #tpu.pipeline_mode<synchronous>, transform_indices = @transform_4, window_bounds = array<i64: 1, 2>}, {transform_indices = @transform_5, window_bounds = array<i64: 8, 2>}]} {
    %c0 = arith.constant 0 : index
    %c0_0 = arith.constant 0 : index
    %0 = vector.load %arg1[%c0, %c0_0] : memref<8x32xf32, #tpu.memory_space<vmem>>, vector<8x32xf32>
    %c0_1 = arith.constant 0 : index
    %c0_2 = arith.constant 0 : index
    %1 = vector.load %arg2[%c0_1, %c0_2] : memref<32x16xf32, #tpu.memory_space<vmem>>, vector<32x16xf32>
    %cst = arith.constant dense<0.000000e+00> : vector<8x16xf32>
    %2 = tpu.matmul %0, %1, %cst {dimension_numbers = #tpu.dot_dimension_numbers<[1], [0], [0], [1], [0, 0, 1, 1], [], []>} : vector<8x32xf32>, vector<32x16xf32>, vector<8x16xf32> -> vector<8x16xf32>
    %c0_3 = arith.constant 0 : index
    %c0_4 = arith.constant 0 : index
    %3 = vector.load %arg3[%c0_3, %c0_4] : memref<1x16xf32, #tpu.memory_space<vmem>>, vector<1x16xf32>
    %4 = vector.broadcast %3 : vector<1x16xf32> to vector<8x16xf32>
    %5 = arith.addf %2, %4 : vector<8x16xf32>
    %cst_5 = arith.constant 0.000000e+00 : f32
    %6 = vector.broadcast %cst_5 : f32 to vector<8x16xf32>
    %7 = arith.maximumf %5, %6 : vector<8x16xf32>
    %c0_6 = arith.constant 0 : index
    %c0_7 = arith.constant 0 : index
    %8 = vector.load %arg4[%c0_6, %c0_7] : memref<16x2xf32, #tpu.memory_space<vmem>>, vector<16x2xf32>
    %cst_8 = arith.constant dense<0.000000e+00> : vector<8x2xf32>
    %9 = tpu.matmul %7, %8, %cst_8 {dimension_numbers = #tpu.dot_dimension_numbers<[1], [0], [0], [1], [0, 0, 1, 1], [], []>} : vector<8x16xf32>, vector<16x2xf32>, vector<8x2xf32> -> vector<8x2xf32>
    %c0_9 = arith.constant 0 : index
    %c0_10 = arith.constant 0 : index
    %10 = vector.load %arg5[%c0_9, %c0_10] : memref<1x2xf32, #tpu.memory_space<vmem>>, vector<1x2xf32>
    %11 = vector.broadcast %10 : vector<1x2xf32> to vector<8x2xf32>
    %12 = arith.addf %9, %11 : vector<8x2xf32>
    %c0_11 = arith.constant 0 : index
    %c0_12 = arith.constant 0 : index
    %13 = vector.load %arg6[%c0_11, %c0_12] : memref<8x2xf32, #tpu.memory_space<vmem>>, vector<8x2xf32>
    tpu.vector_store %arg6[%c0_11, %c0_12], %12 {strides = array<i32>} : memref<8x2xf32, #tpu.memory_space<vmem>>, vector<8x2xf32>,
    return
  }
  func.func @transform_0(%arg0: i32) -> (i32, i32) {
    %c0_i32 = arith.constant 0 : i32
    %c0_i32_0 = arith.constant 0 : i32
    return %arg0, %c0_i32 : i32, i32
  }
  func.func @transform_1(%arg0: i32) -> (i32, i32) {
    %c0_i32 = arith.constant 0 : i32
    %c0_i32_0 = arith.constant 0 : i32
    %c0_i32_1 = arith.constant 0 : i32
    return %c0_i32, %c0_i32_0 : i32, i32
  }
  func.func @transform_2(%arg0: i32) -> (i32, i32) {
    %c0_i32 = arith.constant 0 : i32
    %c0_i32_0 = arith.constant 0 : i32
    %c0_i32_1 = arith.constant 0 : i32
    return %c0_i32, %c0_i32_0 : i32, i32
  }
  func.func @transform_3(%arg0: i32) -> (i32, i32) {
    %c0_i32 = arith.constant 0 : i32
    %c0_i32_0 = arith.constant 0 : i32
    %c0_i32_1 = arith.constant 0 : i32
    return %c0_i32, %c0_i32_0 : i32, i32
  }
  func.func @transform_4(%arg0: i32) -> (i32, i32) {
    %c0_i32 = arith.constant 0 : i32
    %c0_i32_0 = arith.constant 0 : i32
    %c0_i32_1 = arith.constant 0 : i32
    return %c0_i32, %c0_i32_0 : i32, i32
  }
  func.func @transform_5(%arg0: i32) -> (i32, i32) {
    %c0_i32 = arith.constant 0 : i32
    %c0_i32_0 = arith.constant 0 : i32
    return %arg0, %c0_i32 : i32, i32
  }
}

</mosaic_0001>

<bundles_post_ra>
// kernel: tpu_custom_call.1
= control target key start
LH: loop header
LB: loop body
LE: loop exit
PB: predicated region body
PF: predicated region fallthrough
CT: control target
= control target key end

     0   :  { %vm29_vm0 = vcmask 261120   ;;  %vm60_vm1 = vcmask 130048   ;;  %vm84_vm2 = vcmask 15360   ;;  %s154_s1 = inlined_call_operand.vmem [shape: f32[32,16], index: 1, kind: input, shape index: {}]   ;;  %s155_s2 = inlined_call_operand.vmem [shape: f32[1,16], index: 2, kind: input, shape index: {}]   ;;  %s156_s0 = inlined_call_operand.vmem [shape: f32[8,32], index: 0, kind: input, shape index: {}]   ;;  %s157_s4 = inlined_call_operand.vmem [shape: f32[1,2], index: 4, kind: input, shape index: {}]   ;;  %s158_s3 = inlined_call_operand.vmem [shape: f32[16,2], index: 3, kind: input, shape index: {}]   ;;  %s159_s5 = inlined_call_operand.vmem [shape: f32[8,2], index: 5, kind: output, shape index: {}]  }
   0x1   :  { %v24_v0 = vld [vmem:[%s154_s1 + $0x18] sm:$0xff]  ;;  %v23_v1 = vld [vmem:[%s154_s1 + $0x10] sm:$0xff]  ;;  %v22_v2 = vld [vmem:[%s154_s1 + $0x8] sm:$0xff] }
   0x2   :  { %45 = vmatpush.msra.mxu0 %v24_v0  ;;  %v21_v3 = vld [vmem:[%s154_s1] sm:$0xff]  ;;  %v55_v5 = vld [vmem:[%s158_s3 + $0x8] sm:$0xff] }
   0x3   :  { %v20_v4 = vld [vmem:[%s156_s0] sm:$0xff]  ;;  %78 = vmatpush.msra.mxu1 %v55_v5 }
   0x4   :  { %46 = vmatpush.msra.mxu0 %v23_v1  ;;  %v54_v6 = vld [vmem:[%s158_s3] sm:$0xff] }
   0x5   :  { %79 = vmatpush.msra.mxu1 %v54_v6  ;;  %v92_v7 = vld [vmem:[%s155_s2] ss:$0 sm:$0xff] }
   0x6   :  { %47 = vmatpush.msra.mxu0 %v22_v2  ;;  %v93_v11 = vld [vmem:[%s157_s4] ss:$0 sm:$0xff] }
   0x8   :  { %48 = vmatpush.msra.mxu0 %v21_v3 }
   0x9   :  { %90 = vmatmul.msk.f32.vlgmr.msra.gmra.mxu0 %vm29_vm0, %v20_v4 }
  0x86   :  { %v50_v8 = vpop.f32.mrf.mxu0 }
  0x87   :  { %v51_v9 = vadd.f32 %v92_v7, %v50_v8 }
  0x89   :  { %v53_v10 = vmax.f32 %v51_v9, 0.0 }
  0x8b   :  { %91 = vmatmul.msk.f32.vlgmr.msra.gmra.mxu1 %vm60_vm1, %v53_v10 }
 0x108   :  { %v81_v12 = vpop.f32.mrf.mxu1 }
 0x109   :  { %v82_v13 = vadd.f32 %v93_v11, %v81_v12 }
 0x10b   :  { %85 = vst.msk [vmem:[%s159_s5] sm:$0xff] %vm84_vm2, %v82_v13 }

</bundles_post_ra>
